<compile_context>
chip_gen: v7x
topology: tpu7x:2x2x1
jax: 0.10.0
libtpu: 0.0.40
codegen_flags: <defaults>
</compile_context>

<pallas_src>
import functools

import jax
import jax.numpy as jnp
from jax.experimental import pallas as pl
from jax.experimental.pallas import tpu as pltpu


def _triplet_block_kernel(logits_ref, diag_ref, out_ref, *, margin, k):
    """Per-row-block hinge + top-k sum; writes one partial sum per grid step."""
    i = pl.program_id(0)

    x = logits_ref[...].astype(jnp.float32)          # (TM, N) row tile
    tm, n = x.shape
    positive = diag_ref[...].astype(jnp.float32)     # (TM, 1) diagonal entries

    # Single iota pair per tile; global row index derived from program_id.
    col_idx = jax.lax.broadcasted_iota(jnp.int32, (tm, n), 1)
    row_local = jax.lax.broadcasted_iota(jnp.int32, (tm, n), 0)
    diag_mask = col_idx == (row_local + i * tm)

    # clamp(margin + logits - positive, min=0), diagonal zeroed.
    hinge = jnp.maximum(margin + x - positive, 0.0)
    hinge = jnp.where(diag_mask, 0.0, hinge)

    if k == 1:
        # Fast path: top-1 is just the row max.
        per_row = jnp.max(hinge, axis=1, keepdims=True)
    else:
        # Unrolled top-k (k is static & tiny). Knock out the first occurrence
        # of the current max with 0.0 (values are >= 0, so the top-k sum is
        # preserved and duplicates behave like torch.topk).
        per_row = jnp.zeros((tm, 1), dtype=jnp.float32)
        work = hinge
        for _ in range(k):
            m = jnp.max(work, axis=1, keepdims=True)                    # (TM,1)
            per_row = per_row + m
            first_hit = jnp.min(
                jnp.where(work == m, col_idx, n), axis=1, keepdims=True)
            work = jnp.where(col_idx == first_hit, 0.0, work)

    block_sum = jnp.sum(per_row)
    # Lane-padded partial-sum block (broadcast the scalar; wrapper reads [0,0]).
    out_ref[...] = jnp.full(out_ref.shape, block_sum, dtype=out_ref.dtype)


def _pick_block_rows(n, itemsize=4, target_block_bytes=8 << 20):
    """Row-tile size: single tile for small N, else the largest divisor of N
    (multiple of 8) whose double-buffered block stays well inside scoped VMEM
    on every generation (incl. v7x's 64 MiB physical / 32 MiB default)."""
    if n * n * itemsize <= target_block_bytes:
        return n                                   # small N: one grid step
    max_rows = max(8, target_block_bytes // (n * itemsize))
    for tm in range(min(n, int(max_rows)), 7, -1):
        if n % tm == 0 and tm % 8 == 0:
            return tm
    return n                                       # fallback: single tile


def triplet_margin_loss(logits, *, margin=0.2, neg_sample_num=1,
                        reduction='mean', block_rows=None):
    """Pallas TPU implementation of TripletMarginLoss.forward (mean/sum)."""
    n = logits.shape[0]
    assert logits.ndim == 2 and logits.shape == (n, n), "logits must be (N, N)"
    k = int(neg_sample_num)
    assert 1 <= k <= n, "neg_sample_num must be in [1, N]"
    if reduction not in ('mean', 'sum'):
        # TODO(synk): reduction='none' needs an (N,)-shaped per-row output path.
        raise ValueError(f"unsupported reduction {reduction!r}")

    tm = _pick_block_rows(n) if block_rows is None else int(block_rows)
    assert n % tm == 0 and (tm % 8 == 0 or tm == n), "bad row-tile size"
    num_blocks = n // tm

    # Precomputed diagonal (O(N) gather in the wrapper) replaces an O(N^2)
    # in-kernel masked reduction.
    diag = jnp.diagonal(logits).reshape(n, 1)

    kernel = functools.partial(_triplet_block_kernel, margin=float(margin), k=k)

    partials = pl.pallas_call(
        kernel,
        out_shape=jax.ShapeDtypeStruct((num_blocks, 8, 128), jnp.float32),
        grid=(num_blocks,),
        in_specs=[
            pl.BlockSpec((tm, n), lambda i: (i, 0)),     # row tile of logits
            pl.BlockSpec((tm, 1), lambda i: (i, 0)),     # matching diag slice
        ],
        out_specs=pl.BlockSpec((1, 8, 128), lambda i: (i, 0, 0)),
        compiler_params=pltpu.CompilerParams(
            dimension_semantics=("parallel",),           # row blocks independent
            vmem_limit_bytes=32 * 1024 * 1024,
        ),
    )(logits, diag)

    total = jnp.sum(partials[:, 0, 0])
    if reduction == 'mean':
        return total / jnp.float32(n)
    return total


def _reference(logits, margin=0.2, neg_sample_num=1, reduction='mean'):
    """Pure-JAX reference mirroring the PyTorch code (for verification)."""
    n = logits.shape[0]
    pos = jnp.diagonal(logits)[:, None]
    out = jnp.maximum(margin + logits - pos, 0.0)
    out = out * (1.0 - jnp.eye(n, dtype=out.dtype))
    top = jax.lax.top_k(out, neg_sample_num)[0]
    row = jnp.sum(top, axis=1)
    return jnp.mean(row) if reduction == 'mean' else jnp.sum(row)


if __name__ == "__main__":
    key = jax.random.PRNGKey(0)
    k1, k2 = jax.random.split(key)

    # Primary check: batch of 8 video/text pairs -> (8, 8) similarity logits, k=1.
    N = 8
    logits = jax.random.normal(k1, (N, N), dtype=jnp.float32)
    loss = triplet_margin_loss(logits, margin=0.2, neg_sample_num=1,
                               reduction='mean')
    loss = jax.block_until_ready(loss)
    ref = _reference(logits, margin=0.2, neg_sample_num=1)
    assert jnp.allclose(loss, ref, atol=1e-5, rtol=1e-5), (loss, ref)

    # Exercise the tiled multi-block grid path and the k>1 top-k path.
    N2 = 16
    logits2 = jax.random.normal(k2, (N2, N2), dtype=jnp.float32)
    loss2 = triplet_margin_loss(logits2, margin=0.2, neg_sample_num=2,
                                reduction='mean', block_rows=8)
    loss2 = jax.block_until_ready(loss2)
    ref2 = _reference(logits2, margin=0.2, neg_sample_num=2)
    assert jnp.allclose(loss2, ref2, atol=1e-5, rtol=1e-5), (loss2, ref2)

    print("KERNEL_OK")
</pallas_src>

<mosaic_0001>
module attributes {stable_mosaic.version = 11 : i64} {
  func.func @_triplet_block_kernel(%arg0: i32, %arg1: memref<8x8xf32, #tpu.memory_space<vmem>>, %arg2: memref<8x1xf32, #tpu.memory_space<vmem>>, %arg3: memref<1x8x128xf32, #tpu.memory_space<vmem>>) attributes {dimension_semantics = [#tpu.dimension_semantics<parallel>], iteration_bounds = array<i64: 1>, scalar_prefetch = 0 : i64, scratch_operands = 0 : i64, tpu.core_type = #tpu.core_type<tc>, window_params = [{transform_indices = @transform_0, window_bounds = array<i64: 8, 8>}, {transform_indices = @transform_1, window_bounds = array<i64: 8, 1>}, {transform_indices = @transform_2, window_bounds = array<i64: 1, 8, 128>}]} {
    %c0 = arith.constant 0 : index
    %c0_0 = arith.constant 0 : index
    %0 = vector.load %arg1[%c0, %c0_0] : memref<8x8xf32, #tpu.memory_space<vmem>>, vector<8x8xf32>
    %c0_1 = arith.constant 0 : index
    %c0_2 = arith.constant 0 : index
    %1 = vector.load %arg2[%c0_1, %c0_2] : memref<8x1xf32, #tpu.memory_space<vmem>>, vector<8x1xf32>
    %2 = tpu.iota {dimensions = array<i32: 1>} : vector<8x8xi32>
    %3 = tpu.iota {dimensions = array<i32: 0>} : vector<8x8xi32>
    %c8_i32 = arith.constant 8 : i32
    %4 = arith.muli %arg0, %c8_i32 : i32
    %5 = vector.broadcast %4 : i32 to vector<8x8xi32>
    %6 = arith.addi %3, %5 : vector<8x8xi32>
    %7 = arith.cmpi eq, %2, %6 : vector<8x8xi32>
    %cst = arith.constant 2.000000e-01 : f32
    %8 = vector.broadcast %cst : f32 to vector<8x8xf32>
    %9 = arith.addf %8, %0 : vector<8x8xf32>
    %10 = vector.broadcast %1 : vector<8x1xf32> to vector<8x8xf32>
    %11 = arith.subf %9, %10 : vector<8x8xf32>
    %cst_3 = arith.constant 0.000000e+00 : f32
    %12 = vector.broadcast %cst_3 : f32 to vector<8x8xf32>
    %13 = arith.maximumf %11, %12 : vector<8x8xf32>
    %cst_4 = arith.constant 0.000000e+00 : f32
    %14 = vector.broadcast %cst_4 : f32 to vector<8x8xf32>
    %15 = arith.select %7, %14, %13 : vector<8x8xi1>, vector<8x8xf32>
    %cst_5 = arith.constant dense<0xFF800000> : vector<8xf32>
    %16 = vector.multi_reduction <maximumf>, %15, %cst_5 [1] : vector<8x8xf32> to vector<8xf32>
    %17 = vector.shape_cast %16 : vector<8xf32> to vector<8x1xf32>
    %18 = vector.shape_cast %17 : vector<8x1xf32> to vector<1x8x1xf32>
    %cst_6 = arith.constant dense<0.000000e+00> : vector<1xf32>
    %19 = vector.multi_reduction <add>, %18, %cst_6 [1, 2] : vector<1x8x1xf32> to vector<1xf32>
    %20 = vector.shape_cast %19 : vector<1xf32> to vector<1x1x1xf32>
    %21 = vector.extract %20[0, 0, 0] : f32 from vector<1x1x1xf32>
    %22 = vector.broadcast %21 : f32 to vector<1x8x128xf32>
    %c0_7 = arith.constant 0 : index
    %c0_8 = arith.constant 0 : index
    %c0_9 = arith.constant 0 : index
    %23 = vector.load %arg3[%c0_7, %c0_8, %c0_9] : memref<1x8x128xf32, #tpu.memory_space<vmem>>, vector<1x8x128xf32>
    tpu.vector_store %arg3[%c0_7, %c0_8, %c0_9], %22 {strides = array<i32>} : memref<1x8x128xf32, #tpu.memory_space<vmem>>, vector<1x8x128xf32>,
    return
  }
  func.func @transform_0(%arg0: i32) -> (i32, i32) {
    %c0_i32 = arith.constant 0 : i32
    %c0_i32_0 = arith.constant 0 : i32
    return %arg0, %c0_i32 : i32, i32
  }
  func.func @transform_1(%arg0: i32) -> (i32, i32) {
    %c0_i32 = arith.constant 0 : i32
    %c0_i32_0 = arith.constant 0 : i32
    return %arg0, %c0_i32 : i32, i32
  }
  func.func @transform_2(%arg0: i32) -> (i32, i32, i32) {
    %c0_i32 = arith.constant 0 : i32
    %c0_i32_0 = arith.constant 0 : i32
    %c0_i32_1 = arith.constant 0 : i32
    return %arg0, %c0_i32, %c0_i32_0 : i32, i32, i32
  }
}

</mosaic_0001>

<bundles_post_ra>
// kernel: tpu_custom_call.1
= control target key start
LH: loop header
LB: loop body
LE: loop exit
PB: predicated region body
PF: predicated region fallthrough
CT: control target
= control target key end

     0   :  { %s126_s0 = inlined_call_operand.vmem [shape: f32[8,8], index: 0, kind: input, shape index: {}]   ;;  %s127_s1 = inlined_call_operand.vmem [shape: f32[8,1], index: 1, kind: input, shape index: {}]   ;;  %s128_s2 = inlined_call_operand.hbm [shape: f32[1,8,128], index: 2, kind: output, shape index: {}]  }
   0x1   :  { %v13_v0 = vld [vmem:[%s127_s1] sm:$0xff] }
   0x2   :  { %7 = vsyncpa [#allocation3], 0  ;;  %v91_v1 = vmov 0   ;;  %v12_v2 = vld [vmem:[%s126_s0] sm:$0xff]  ;;  %v14_v3 = vlaneseq  ;;  %vm31_vm1 = vcmask 64512   ;;  %vm35_vm2 = vcmask 7168  }
   0x3   :  { %66 = vset.pattern.permute.xlu0 %v91_v1  ;;  %v22_v4 = vadd.f32 0.2, %v12_v2  ;;  %s92_s0 = smov [#allocation2]  }
   0x4   :  { %25 = vperm.xlu0 %66, %v13_v0   ;;  %v15_v5 = vand.u32 127, %v14_v3  ;;  %v17_v6 = vshrl.u32 %v14_v3, 7  ;;  %s54_s1 = sshll.u32 %s92_s0, 4  ;;  %s55_s1 = int_to_ptr.vmem [resolvable:$true] %s54_s1 }
   0x5   :  { %s67_s14 = scalar_lea.vmem %s55_s1, 128  ;;  %p72_p1 = scmp.lt.s32.totalorder %s55_s1, %s55_s1 }
   0x6   :  { %vm21_vm0 = vcmp.eq.s32.totalorder %v15_v5, %v17_v6  ;;  %p68_p0 = scmp.ne.s32.totalorder %s55_s1, %s67_s14  ;;  %p73_p2 = scmp.lt.s32.totalorder %s67_s14, %s67_s14 }
   0x8   :  { %p74_p3 = por %p73_p2, %p72_p1 }
   0xa   :  { %p75_p4 = pnand %p74_p3, %p68_p0 }
  0x83   :  { %v26_v7 = vpop.permute.xlu0 %25 }
  0x84   :  { %v28_v8 = vsub.f32 %v22_v4, %v26_v7 }
  0x86   :  { %v29_v9 = vmax.f32 %v28_v8, 0.0 }
  0x88   :  { %v30_v10 = vsel %vm21_vm0, 0.0, %v29_v9 }
  0x89   :  { %v32_v11 = vsel %vm31_vm1, %v30_v10, -inf }
  0x8a   :  { %33 = vmax.xlane.f32.xlu0 %v32_v11 }
 0x117   :  { %v34_v12 = vpop.xlane.xlu0 %33 }
 0x118   :  { %v36_v13 = vsel %vm35_vm2, %v34_v12, 0.0 }
 0x119   :  { %37 = vadd.xlane.f32.xlu1 %v36_v13 }
 0x1a6   :  { %v38_v14 = vpop.xlane.xlu1 %37 }
 0x1a7   :  { %v39_v15 = vrot.slane %v38_v14, 4 }
 0x1a9   :  { %v40_v16 = vadd.f32 %v39_v15, %v38_v14 }
 0x1ab   :  { %v41_v17 = vrot.slane %v40_v16, 2 }
 0x1ad   :  { %v42_v18 = vadd.f32 %v41_v17, %v40_v16 }
 0x1af   :  { %v43_v19 = vrot.slane %v42_v18, 1 }
 0x1b1   :  { %v44_v20 = vadd.f32 %v43_v19, %v42_v18 }
 0x1b3   :  { %62 = vpush %v44_v20 }
 0x1e4   :  { %s63_s13 = spop %62 }
 0x1e5   :  { %v46_v21 = vstv %s63_s13 }
 0x1e6   :  { %47 = vst [vmem:[#allocation2] sm:$0xff] %v46_v21 }
 0x1e7   :  { %78 = shalt.err (!%p75_p4)
}
 0x1e8   :  { %s79_s17 = scalar_lea.hbm %s128_s2, 128 }
 0x1e9   :  { %p80_p5 = scmp.ne.s32.totalorder %s128_s2, %s79_s17  ;;  %p83_p6 = scmp.lt.u32.totalorder %s79_s17, %s128_s2 }
 0x1eb   :  { %p85_p7 = pnand %p83_p6, %p80_p5 }
 0x1ed   :  { %88 = shalt.err (!%p85_p7)
}
 0x1ee   :  { %57 = dma.vmem_to_hbm [thread:$0]  %s55_s1, 128, %s128_s2, [#allocation3]  }
 0x1ef   :  { %89 = dma.done.wait [#allocation3], 128  }
 0x1f0   :  { %90 = vsyncadd [#allocation3], 4294967168 }
 0x1f1   :  { %61 = vsyncpa [#allocation3], 1 }

</bundles_post_ra>
